<compile_context>
chip_gen: v6e
topology: v6e:2x2x1
jax: 0.10.0
libtpu: 0.0.40
codegen_flags: <defaults>
</compile_context>

<pallas_src>
import functools

import jax
import jax.numpy as jnp
from jax import lax
from jax.experimental import pallas as pl
from jax.experimental.pallas import tpu as pltpu


def _round_up(x, m):
    return ((x + m - 1) // m) * m


def _vmem_budget_bytes():
    # Physical VMEM: 128 MiB (v5e/v6e), 64 MiB per TensorCore (v7x).
    # Leave headroom: cap at ~100 MiB, and ~48 MiB on v7x.
    try:
        cap = int(pltpu.get_tpu_info().vmem_capacity_bytes)
    except Exception:
        cap = 64 * 1024 * 1024  # conservative (v7x-sized) fallback
    return min(cap - 16 * 1024 * 1024, 100 * 1024 * 1024)


# ---------------------------------------------------------------------------
# Path 1: X VMEM-resident, per-output-tile row gather (pure data movement).
# ---------------------------------------------------------------------------
def _gather_resident_kernel(perm_ref, x_ref, o_ref, *, tm):
    # perm_ref: SMEM int32[n_pad]    scalar-prefetched permutation
    # x_ref:    VMEM (n_pad, d_pad)  whole feature matrix, resident (DMA'd once)
    # o_ref:    VMEM (tm, d_pad)     lane-dense output row tile
    base = pl.program_id(0) * tm

    def body(r, carry):
        src = perm_ref[base + r]
        o_ref[pl.ds(r, 1), :] = x_ref[pl.ds(src, 1), :]
        return carry

    lax.fori_loop(0, tm, body, 0)


# ---------------------------------------------------------------------------
# Path 2: streaming row gather -- perm drives the input BlockSpec index_map.
# ---------------------------------------------------------------------------
def _gather_stream_kernel(perm_ref, x_row_ref, o_row_ref):
    del perm_ref  # only consumed inside the index_maps
    o_row_ref[...] = x_row_ref[...]


def permutate_graph(features, perm, *, force_stream=False):
    """Returns features[perm, :] computed with a Pallas row-gather kernel."""
    n, d = features.shape
    perm = perm.astype(jnp.int32)

    # Lane-dense feature dim and a 128/256-aligned-ish row tile.
    d_pad = _round_up(d, 128)
    tm = 256 if n >= 256 else _round_up(n, 8)
    n_pad = _round_up(n, tm)

    x = features
    if d_pad != d or n_pad != n:
        x = jnp.pad(x, ((0, n_pad - n), (0, d_pad - d)))
    if n_pad != n:
        # Padded output rows gather row 0; they are sliced off below.
        perm = jnp.pad(perm, (0, n_pad - n))

    itemsize = jnp.dtype(x.dtype).itemsize
    # Conservative: count double buffers for the resident X block and output.
    resident_need = (2 * n_pad * d_pad + 2 * tm * d_pad) * itemsize + (1 << 20)
    budget = _vmem_budget_bytes()

    if resident_need <= budget and not force_stream:
        kernel = functools.partial(_gather_resident_kernel, tm=tm)
        out = pl.pallas_call(
            kernel,
            out_shape=jax.ShapeDtypeStruct((n_pad, d_pad), x.dtype),
            grid_spec=pltpu.PrefetchScalarGridSpec(
                num_scalar_prefetch=1,                      # perm -> SMEM
                grid=(n_pad // tm,),
                in_specs=[
                    # Whole feature matrix resident in VMEM; constant block
                    # index => DMA'd from HBM exactly once, never re-streamed.
                    pl.BlockSpec((n_pad, d_pad), lambda i, perm_ref: (0, 0)),
                ],
                out_specs=pl.BlockSpec((tm, d_pad), lambda i, perm_ref: (i, 0)),
            ),
            compiler_params=pltpu.CompilerParams(
                dimension_semantics=("parallel",),
                vmem_limit_bytes=int(
                    min(max(resident_need + (4 << 20), 32 << 20), budget)
                ),
            ),
        )(perm, x)
    else:
        # Streaming fallback: each grid step DMAs exactly the source row it
        # needs, selected by the scalar-prefetched permutation in index_map.
        out = pl.pallas_call(
            _gather_stream_kernel,
            out_shape=jax.ShapeDtypeStruct((n_pad, d_pad), x.dtype),
            grid_spec=pltpu.PrefetchScalarGridSpec(
                num_scalar_prefetch=1,                      # perm -> SMEM
                grid=(n_pad,),
                in_specs=[
                    pl.BlockSpec((1, d_pad), lambda i, perm_ref: (perm_ref[i], 0)),
                ],
                out_specs=pl.BlockSpec((1, d_pad), lambda i, perm_ref: (i, 0)),
            ),
            compiler_params=pltpu.CompilerParams(
                dimension_semantics=("arbitrary",),
            ),
        )(perm, x)

    if d_pad != d or n_pad != n:
        out = out[:n, :d]
    return out


if __name__ == "__main__":
    key = jax.random.PRNGKey(0)
    k_feat, k_perm, k_feat2, k_perm2 = jax.random.split(key, 4)

    # Graph 1: 512 nodes, 96-dim f32 features (exercises d-padding to 128 and
    # multiple output row tiles through the VMEM-resident path).
    n, d = 512, 96
    features = jax.random.normal(k_feat, (n, d), dtype=jnp.float32)
    perm = jax.random.permutation(k_perm, n).astype(jnp.int32)
    out = jax.block_until_ready(permutate_graph(features, perm))
    expected = features[perm, :]
    assert out.shape == expected.shape and out.dtype == expected.dtype
    assert jnp.array_equal(out, expected), "resident-path permutation mismatch"

    # Graph 2: ragged n=200, bf16 features (exercises row padding), plus the
    # streaming scalar-prefetch path forced explicitly.
    n2, d2 = 200, 128
    features2 = jax.random.normal(k_feat2, (n2, d2), dtype=jnp.float32).astype(jnp.bfloat16)
    perm2 = jax.random.permutation(k_perm2, n2).astype(jnp.int32)
    out2 = jax.block_until_ready(permutate_graph(features2, perm2))
    assert jnp.array_equal(out2, features2[perm2, :]), "resident-path bf16 mismatch"

    out3 = jax.block_until_ready(permutate_graph(features2, perm2, force_stream=True))
    assert jnp.array_equal(out3, features2[perm2, :]), "streaming-path mismatch"

    print("KERNEL_OK")
</pallas_src>

<mosaic_0001>
module attributes {stable_mosaic.version = 11 : i64} {
  func.func @_gather_resident_kernel(%arg0: i32, %arg1: memref<512xi32, #tpu.memory_space<smem>>, %arg2: memref<512x128xf32, #tpu.memory_space<vmem>>, %arg3: memref<256x128xf32, #tpu.memory_space<vmem>>) attributes {dimension_semantics = [#tpu.dimension_semantics<parallel>], iteration_bounds = array<i64: 2>, scalar_prefetch = 1 : i64, scratch_operands = 0 : i64, tpu.core_type = #tpu.core_type<tc>, window_params = [{pipeline_mode = #tpu.pipeline_mode<synchronous>, transform_indices = @transform_0, window_bounds = array<i64: 512, 128>}, {transform_indices = @transform_1, window_bounds = array<i64: 256, 128>}]} {
    %c256_i32 = arith.constant 256 : i32
    %0 = arith.muli %arg0, %c256_i32 : i32
    %c0_i32 = arith.constant 0 : i32
    %c256_i32_0 = arith.constant 256 : i32
    %1 = arith.addi %c0_i32, %c256_i32_0 : i32
    %c1_i32 = arith.constant 1 : i32
    scf.for %arg4 = %c0_i32 to %1 step %c1_i32  : i32 {
      %2 = arith.addi %0, %arg4 : i32
      %3 = arith.index_cast %2 : i32 to index
      %4 = memref.load %arg1[%3] : memref<512xi32, #tpu.memory_space<smem>>
      %5 = arith.index_cast %4 : i32 to index
      %c0 = arith.constant 0 : index
      %6 = vector.load %arg2[%5, %c0] : memref<512x128xf32, #tpu.memory_space<vmem>>, vector<1x128xf32>
      %7 = arith.index_cast %arg4 : i32 to index
      %c0_2 = arith.constant 0 : index
      %8 = vector.load %arg3[%7, %c0_2] : memref<256x128xf32, #tpu.memory_space<vmem>>, vector<1x128xf32>
      tpu.vector_store %arg3[%7, %c0_2], %6 {strides = array<i32>} : memref<256x128xf32, #tpu.memory_space<vmem>>, vector<1x128xf32>,
    }
    %c256_i32_1 = arith.constant 256 : i32
    return
  }
  func.func @transform_0(%arg0: i32, %arg1: memref<512xi32, #tpu.memory_space<smem>>) -> (i32, i32) {
    %c0_i32 = arith.constant 0 : i32
    %c0_i32_0 = arith.constant 0 : i32
    %c0_i32_1 = arith.constant 0 : i32
    return %c0_i32, %c0_i32_0 : i32, i32
  }
  func.func @transform_1(%arg0: i32, %arg1: memref<512xi32, #tpu.memory_space<smem>>) -> (i32, i32) {
    %c0_i32 = arith.constant 0 : i32
    %c0_i32_0 = arith.constant 0 : i32
    return %arg0, %c0_i32 : i32, i32
  }
}

</mosaic_0001>

<bundles_post_ra>
// kernel: tpu_custom_call.1
= control target key start
LH: loop header
LB: loop body
LE: loop exit
PB: predicated region body
PF: predicated region fallthrough
CT: control target
= control target key end

     0   :  { %s398_s9 = smov [#allocation3]   ;;  %s539_s0 = inlined_call_operand.hbm [shape: s32[512], index: 0, kind: input, shape index: {}]   ;;  %s540_s1 = inlined_call_operand.hbm [shape: f32[512,128], index: 1, kind: input, shape index: {}]   ;;  %s541_s2 = inlined_call_operand.hbm [shape: f32[512,128], index: 2, kind: output, shape index: {}]  }
   0x1   :  { %8 = dma.hbm_to_smem %s539_s0, 64, %s398_s9, [#allocation2] }
   0x2   :  { %368 = dma.done.wait [#allocation2], 64 }
   0x3   :  { %369 = vsyncadd [#allocation2], 4294967232 }
   0x4   :  { %10 = sfence }
   0x5   :  { %11 = vsyncpa [#allocation5], 0 }
   0x6   :  { %12 = vsyncpa [#allocation6], 0 }
   0x7   :  { %14 = vsyncpa [#allocation6 + $0x1], 0  ;;  %s423_s12 = smov 0   ;;  %s425_s13 = smov 0  }
   0x8   :  { %s427_s14 = smov 0   ;;  %s429_s15 = smov 0  }
   0x9 LB: > { %s444_s0 = sadd.s32 4294967295, %s392_s15   ;;  %s212_s16 = sadd.s32 4294967294, %s392_s15   ;;  %s392_s15 = sphi %s429_s15, %s549_s15   ;;  %s388_s14 = sphi %s427_s14, %s548_s14   ;;  %s384_s13 = sphi %s425_s13, %s547_s13   ;;  %s380_s12 = sphi %s423_s12, %s546_s12  }
   0xa   : > { %s448_s17 = sadd.s32 1, %s392_s15   ;;  %s48_s18 = sadd.s32 1, %s388_s14 }
   0xb   : > { %s45_s19 = ssub.s32 %s392_s15, %s448_s17  ;;  %p58_p0 = scmp.ne.s32.totalorder %s388_s14, %s384_s13 }
   0xc   : > { %p46_p1 = scmp.eq.s32.totalorder %s45_s19, 0  ;;  %p59_p2 = scmp.eq.s32.totalorder %s444_s0, 1 }
   0xd   : > { %p64_p3 = scmp.ne.s32.totalorder %s384_s13, %s380_s12  ;;  %p65_p4 = scmp.eq.s32.totalorder %s212_s16, 1 }
   0xe   : > { %s459_s20 = scalar_select %p46_p1, %s388_s14, %s48_s18  }
   0xf   : > { %p461_p5 = por %p59_p2, %p58_p0  ;;  %p465_p6 = por %p65_p4, %p64_p3 }
  0x10   : > { %p213_p7 = scmp.ge.s32.totalorder %s392_s15, 1  ;;  %p72_p8 = scmp.lt.s32.totalorder %s392_s15, 3 }
  0x11   : > { %s543_s22 = scalar_select %p465_p6, 1, 0 }
  0x12   : > { %p239_p9 = scmp.eq.s32.totalorder %s444_s0, 0  ;;  %p472_p10 = pnand %p213_p7, %p72_p8 }
  0x13   : > { %s399_s24 = smov [#allocation4]  }
  0x14   : > { %s84_s25 = sshll.u32 %s399_s24, 4  ;;  %p231_p11 = pneg %p472_p10  ;;  %s85_s25 = int_to_ptr.vmem [resolvable:$true] %s84_s25 }
  0x15   : > { %s307_s26 = scalar_lea.vmem %s85_s25, 8192  ;;  %p315_p3 = scmp.lt.s32.totalorder %s85_s25, %s85_s25 }
  0x16   : > { %p232_p12 = pnand %p239_p9, %p231_p11  ;;  %p308_p0 = scmp.ne.s32.totalorder %s85_s25, %s307_s26 }
  0x17   : > { %p316_p4 = scmp.lt.s32.totalorder %s307_s26, %s307_s26 }
  0x18   : > { %p298_p13 = pneg %p232_p12 }
  0x19   : > { %p317_p6 = por %p316_p4, %p315_p3 }
  0x1a   : > { %p310_p1 = pnand %p308_p0, %p298_p13 }
  0x1c   : > { %p311_p2 = pneg %p310_p1 }
  0x1e   : > { %p318_p7 = pnand %p317_p6, %p311_p2 }
  0x20   : > { %321 = shalt.err (!%p318_p7)
}
  0x21   : > { %s400_s27 = smov 128   ;;  %s401_s28 = smov 8  }
  0x22   : > { %234 = dma.hbm_to_vmem [thread:$0]  (!%p232_p12), %s540_s1, 8192, %s85_s25, [#allocation5], %s400_s27, %s400_s27, %s401_s28  }
  0x23   : > { %100 = sbr.rel (%p472_p10) target bundleno = 72 (0x48), region = 24 }
  0x28   : > { %371 = dma.done.wait (%p239_p9), [#allocation5], 8192  }
  0x29   : > { %373 = vsyncadd (%p239_p9), [#allocation5], 4294959104  ;;  %s112_s3 = sand.u32 1, %s384_s13   ;;  %s218_s4 = sshll.u32 %s444_s0, 8 }
  0x2a   : > { %s217_s5 = sshll.u32 %s112_s3, 8  ;;  %s394_s7 = smov 0  }
  0x2b   : > { %s114_s6 = scalar_lea.vmem [#allocation7], %s217_s5 }
  0x2c LB: >> { %s123_s8 = sadd.s32 %s396_s7, %s218_s4  ;;  %s127_s10 = scalar_lea.vmem %s114_s6, %s396_s7 [#allocation7]  ;;  %s396_s7 = sphi %s394_s7, %s122_s7  }
  0x2d   : >> { %s124_s9 = sld [smem:[#allocation3 + %s123_s8]]  ;;  %s122_s7 = sadd.s32 1, %s396_s7  }
  0x2e   : >> { %p119_p6 = scmp.ge.s32.totalorder %s122_s7, 256  }
  0x2f   : > { %s224_s16 = sshll.u32 (%p119_p6), %s444_s0, 12  ;;  %s143_s24 = sshll.u32 (%p119_p6), %s114_s6, 4  ;;  %s497_s24 = int_to_ptr.vmem [resolvable:$true] %s143_s24 }
  0x30   : > { %s495_s23 = scalar_lea.hbm (%p119_p6), %s541_s2, %s224_s16  ;;  %s499_s25 = scalar_lea.sflag (%p119_p6), [#allocation6], %s112_s3 }
  0x31   : > { %121 = sbr.rel (!%p119_p6) target bundleno = 44 (0x2c), region = 70  ;;  %s322_s26 = scalar_lea.vmem (%p119_p6), %s497_s24, 4096 }
  0x32   : > { %p323_p8 = scmp.ne.s32.totalorder (%p119_p6), %s497_s24, %s322_s26  ;;  %s402_s27 = smov (%p119_p6), [#allocation7]  }
  0x33   : >> { %s125_s11 = scalar_lea.vmem [#allocation4], %s124_s9  ;;  %s326_s0 = sshll.u32 (%p119_p6), %s402_s27, 4  ;;  %s327_s0 = int_to_ptr.vmem [resolvable:$false] %s326_s0 }
  0x34   : >> { %v126_v0 = vld [vmem:[%s125_s11] sm:$0x1]  ;;  %p324_p9 = pnand (%p119_p6), %p323_p8, %p461_p5  ;;  %s328_s28 = scalar_lea.vmem (%p119_p6), %s327_s0, 8192 }
  0x35   : >> { %128 = vst [vmem:[%s127_s10] sm:$0x1] %v126_v0  ;;  %p329_p11 = scmp.lt.s32.totalorder (%p119_p6), %s497_s24, %s327_s0  ;;  %p330_p12 = scmp.lt.s32.totalorder (%p119_p6), %s328_s28, %s322_s26 }
  0x36   : > { %p325_p10 = pneg %p324_p9 }
  0x37   : > { %p331_p13 = por %p330_p12, %p329_p11 }
  0x39   : > { %p332_p0 = pnand %p331_p13, %p325_p10 }
  0x3b   : > { %335 = shalt.err (!%p332_p0)
}
  0x3c   : > { %s336_s29 = scalar_lea.hbm %s495_s23, 4096  ;;  %s340_s4 = scalar_lea.hbm %s541_s2, 8192 }
  0x3d   : > { %p337_p1 = scmp.ne.s32.totalorder %s495_s23, %s336_s29  ;;  %p341_p4 = scmp.lt.s32.totalorder %s495_s23, %s541_s2 }
  0x3e   : > { %p342_p7 = scmp.lt.s32.totalorder %s340_s4, %s336_s29 }
  0x3f   : > { %p338_p2 = pnand %p337_p1, %p461_p5 }
  0x40   : > { %p343_p6 = por %p342_p7, %p341_p4 }
  0x41   : > { %p339_p3 = pneg %p338_p2 }
  0x43   : > { %p344_p8 = pnand %p343_p6, %p339_p3 }
  0x45   : > { %347 = shalt.err (!%p344_p8)
}
  0x46   : > { %s403_s7 = smov 128   ;;  %s404_s8 = smov 8  }
  0x47   : > { %229 = dma.vmem_to_hbm [thread:$0]  (%p461_p5), %s497_s24, 4096, %s495_s23, %s499_s25, %s403_s7, %s403_s7, %s404_s8  }
  0x48 PF: > { %p241_p9 = scmp.ge.s32.totalorder %s392_s15, 2  ;;  %s158_s9 = sand.u32 1, %s380_s12  }
  0x49   : > { %p545_p10 = scmp.ne.s32.totalorder %s543_s22, 0  ;;  %s159_s10 = scalar_lea.sflag [#allocation6], %s158_s9 }
  0x4b   : > { %p236_p11 = pnand %p241_p9, %p545_p10 }
  0x4d   : > { %p237_p12 = pneg %p236_p11 }
  0x4f   : > { %375 = dma.done.wait (%p237_p12), %s159_s10, 4096  }
  0x50   : > { %377 = vsyncadd (%p237_p12), %s159_s10, 4294963200  ;;  %p17_p13 = scmp.ge.s32.totalorder %s448_s17, 4   ;;  %s546_s12 = smov %s384_s13 }
  0x51   : > { %s547_s13 = smov %s388_s14  ;;  %s548_s14 = smov %s459_s20 }
  0x52   : > { %s549_s15 = smov %s448_s17  ;;  %19 = sbr.rel (!%p17_p13) target bundleno = 9 (0x9), region = 81 }
  0x57   :  { %164 = vsyncpa [#allocation5], 1 }
  0x58   :  { %166 = vsyncpa [#allocation5 + $0x1], 1 }
  0x59   :  { %167 = vsyncpa [#allocation6], 1 }
  0x5a   :  { %169 = vsyncpa [#allocation6 + $0x1], 1 }

</bundles_post_ra>
